<compile_context>
chip_gen: v7x
topology: tpu7x:2x2x1
jax: 0.10.0
libtpu: 0.0.40
codegen_flags: <defaults>
</compile_context>

<pallas_src>
import functools

import jax
import jax.numpy as jnp
from jax.experimental import pallas as pl
from jax.experimental.pallas import tpu as pltpu


def _per_buffer_budget_bytes():
    """Per-input-buffer VMEM budget, chosen by TPU generation."""
    try:
        kind = jax.devices()[0].device_kind.lower()
    except Exception:
        kind = ""
    if "v5 lite" in kind or "v5e" in kind or "v5lite" in kind:
        return 3 << 20        # v5e: ~0.82 TB/s, 2-4 MiB already amortizes step cost
    if "v6" in kind or "trillium" in kind:
        return 6 << 20        # v6e: 128 MiB physical VMEM, raise tiles to ~6 MiB
    if "v7" in kind or "tpu7" in kind:
        return 6 << 20        # v7x: 64 MiB physical; 2 x 6 MiB doubled buffers << 48 MiB
    return 4 << 20            # unknown / older generations: conservative


def _channel_attention_kernel(x_ref, w1t_ref, w2t_ref, out_ref,
                              sum_ref, max_ref,
                              *, hw_tile, hw_total, needs_mask):
    # x_ref:   (n_tile, C, hw_tile)  streamed input tile (native dtype)
    # w1t_ref: (C, hidden)           first 1x1 conv weight, transposed
    # w2t_ref: (hidden, C)           second 1x1 conv weight, transposed
    # out_ref: (n_tile, 1, C)
    # sum_ref: (n_tile, C) f32       running (raw) spatial sum
    # max_ref: (n_tile, C) f32       running spatial max
    k = pl.program_id(1)
    n_k = pl.num_programs(1)

    @pl.when(k == 0)
    def _init():
        sum_ref[...] = jnp.zeros_like(sum_ref)
        max_ref[...] = jnp.full_like(max_ref, -jnp.inf)

    x = x_ref[...]                                   # (n_tile, C, hw_tile)

    def _accumulate(x_sum, x_max):
        sum_ref[...] += jnp.sum(x_sum, axis=-1, dtype=jnp.float32)
        max_ref[...] = jnp.maximum(max_ref[...],
                                   jnp.max(x_max, axis=-1).astype(jnp.float32))

    if needs_mask:
        # Steady-state steps: no masking at all (pure sum + max).
        @pl.when(k < n_k - 1)
        def _steady():
            _accumulate(x, x)

        # Final step: mask the padded tail lanes (OOB content is unspecified).
        @pl.when(k == n_k - 1)
        def _tail():
            lane = jax.lax.broadcasted_iota(jnp.int32, (1, 1, hw_tile), 2)
            valid = lane < (hw_total - k * hw_tile)
            _accumulate(jnp.where(valid, x, jnp.zeros_like(x)),
                        jnp.where(valid, x, jnp.full_like(x, -jnp.inf)))
    else:
        _accumulate(x, x)

    @pl.when(k == n_k - 1)
    def _finalize():
        w1t = w1t_ref[...].astype(jnp.float32)       # (C, hidden)
        w2t = w2t_ref[...].astype(jnp.float32)       # (hidden, C)

        def fc(v):                                   # (n_tile, C) -> (n_tile, C)
            h = jnp.maximum(
                jnp.dot(v, w1t, preferred_element_type=jnp.float32), 0.0)
            return jnp.dot(h, w2t, preferred_element_type=jnp.float32)

        mean = sum_ref[...] * jnp.float32(1.0 / hw_total)
        y = jax.nn.sigmoid(fc(mean) + fc(max_ref[...]))      # (n_tile, C)
        out_ref[...] = y[:, None, :].astype(out_ref.dtype)


def channel_attention(x, w1, w2, *, hw_tile_cap=None):
    """x: (N, C, H, W) float.  w1: (C//16, C, 1, 1).  w2: (C, C//16, 1, 1).
    Returns sigmoid(fc(avg_pool(x)) + fc(max_pool(x))) of shape (N, C, 1, 1).
    `hw_tile_cap` is a test-only knob to force a multi-step spatial reduction."""
    N, C, H, W = x.shape
    hidden = w1.shape[0]
    HW = H * W
    itemsize = jnp.dtype(x.dtype).itemsize

    # ---- batch tiling: >= 2 blocks whenever N >= 2 (v7x megacore), <= 8 rows.
    n_tile = max(1, min(8, pl.cdiv(N, 2)))

    # ---- spatial (reduction) tiling against a per-generation VMEM budget.
    budget = _per_buffer_budget_bytes()
    # Very wide C: shrink n_tile so even a 128-lane block stays within budget.
    while n_tile > 1 and n_tile * C * 128 * itemsize > budget:
        n_tile = max(1, n_tile // 2)

    lanes = max(128, budget // max(1, n_tile * C * itemsize))
    hw_tile = (lanes // 128) * 128
    if hw_tile_cap is not None:
        hw_tile = min(hw_tile, max(128, (hw_tile_cap // 128) * 128))
    if HW <= hw_tile:
        hw_tile = HW                       # full spatial extent in one block
    needs_mask = (HW % hw_tile) != 0       # only the last reduction step masks

    x_flat = x.reshape(N, C, HW)           # no padding: Pallas handles ragged blocks
    w1t = jnp.transpose(w1.reshape(hidden, C))    # (C, hidden)
    w2t = jnp.transpose(w2.reshape(C, hidden))    # (hidden, C)

    grid = (pl.cdiv(N, n_tile), pl.cdiv(HW, hw_tile))

    # Explicit VMEM limit only when the double-buffered blocks approach the
    # default scoped limit (16 MiB on v5e); keep <= 48 MiB for v7x (64 MiB phys).
    x_block_bytes = n_tile * C * hw_tile * itemsize
    w_bytes = 2 * C * hidden * jnp.dtype(w1.dtype).itemsize
    vmem_needed = 2 * x_block_bytes + 2 * w_bytes + (2 << 20)
    vmem_limit = None
    if vmem_needed > (12 << 20):
        vmem_limit = int(min(48 << 20, vmem_needed + (4 << 20)))

    cost = pl.CostEstimate(
        flops=int(2 * N * C * HW + 8 * N * C * hidden),
        transcendentals=int(N * C),
        bytes_accessed=int(N * C * HW * itemsize + w_bytes + N * C * itemsize),
    )

    kernel = functools.partial(
        _channel_attention_kernel,
        hw_tile=hw_tile, hw_total=HW, needs_mask=needs_mask)

    out = pl.pallas_call(
        kernel,
        # (N, 1, C): batch dim is third-from-minor, so n_tile is unconstrained
        # by the (8, 128) block rule; reshaped to (N, C, 1, 1) below.
        out_shape=jax.ShapeDtypeStruct((N, 1, C), x.dtype),
        grid_spec=pltpu.PrefetchScalarGridSpec(
            num_scalar_prefetch=0,
            grid=grid,
            in_specs=[
                # streamed activation tile: block index follows (batch, spatial)
                pl.BlockSpec((n_tile, C, hw_tile), lambda i, k: (i, 0, k)),
                # weights: constant block index -> DMA'd once, not per step
                pl.BlockSpec((C, hidden), lambda i, k: (0, 0)),
                pl.BlockSpec((hidden, C), lambda i, k: (0, 0)),
            ],
            out_specs=pl.BlockSpec((n_tile, 1, C), lambda i, k: (i, 0, 0)),
            scratch_shapes=[pltpu.VMEM((n_tile, C), jnp.float32),   # running sum
                            pltpu.VMEM((n_tile, C), jnp.float32)],  # running max
        ),
        compiler_params=pltpu.CompilerParams(
            dimension_semantics=("parallel", "arbitrary"),
            vmem_limit_bytes=vmem_limit),
        cost_estimate=cost,
    )(x_flat, w1t, w2t)

    return out.reshape(N, C, 1, 1)


def channel_attention_ref(x, w1, w2):
    # Pure-JAX reference mirroring the PyTorch forward.
    N, C, H, W = x.shape
    hidden = w1.shape[0]
    avg = jnp.mean(x, axis=(2, 3))   # (N, C)
    mx = jnp.max(x, axis=(2, 3))     # (N, C)
    w1m = w1.reshape(hidden, C)
    w2m = w2.reshape(C, hidden)

    def fc(v):
        h = jnp.maximum(v @ w1m.T, 0.0)
        return h @ w2m.T

    return jax.nn.sigmoid(fc(avg) + fc(mx)).reshape(N, C, 1, 1)


def _run_case(key, N, C, H, W, hw_tile_cap=None):
    hidden = C // 16
    kx, k1, k2 = jax.random.split(key, 3)
    x = jax.random.normal(kx, (N, C, H, W), dtype=jnp.float32)
    w1 = 0.1 * jax.random.normal(k1, (hidden, C, 1, 1), dtype=jnp.float32)
    w2 = 0.1 * jax.random.normal(k2, (C, hidden, 1, 1), dtype=jnp.float32)

    out = jax.block_until_ready(
        channel_attention(x, w1, w2, hw_tile_cap=hw_tile_cap))
    ref = channel_attention_ref(x, w1, w2)
    assert out.shape == (N, C, 1, 1)
    assert jnp.allclose(out, ref, atol=2e-5, rtol=2e-5), \
        f"mismatch vs reference for shape {(N, C, H, W)} (cap={hw_tile_cap})"


if __name__ == "__main__":
    key = jax.random.PRNGKey(0)
    k0, k1, k2, k3 = jax.random.split(key, 4)

    # Small canonical case (in_planes must be >= 16 since hidden = C // 16);
    # N=2 -> two parallel batch blocks (megacore path on v7x).
    _run_case(k0, N=2, C=32, H=8, W=8)
    # Multi-step spatial reduction + gated tail-lane masking
    # (HW=1600, forced hw_tile=256 -> 7 reduction steps, ragged last block).
    _run_case(k1, N=2, C=32, H=40, W=40, hw_tile_cap=256)
    # Ragged (partial) final batch block: N=5, n_tile=3 -> blocks of 3 and 2.
    _run_case(k2, N=5, C=32, H=12, W=12)
    # Combined: partial batch block + multi-step reduction + tail mask.
    _run_case(k3, N=3, C=32, H=20, W=20, hw_tile_cap=128)

    print("KERNEL_OK")
</pallas_src>

<mosaic_0001>
module attributes {stable_mosaic.version = 11 : i64} {
  func.func @_channel_attention_kernel(%arg0: i32, %arg1: i32, %arg2: memref<1x32x64xf32, #tpu.memory_space<vmem>>, %arg3: memref<32x2xf32, #tpu.memory_space<vmem>>, %arg4: memref<2x32xf32, #tpu.memory_space<vmem>>, %arg5: memref<1x1x32xf32, #tpu.memory_space<vmem>>, %arg6: memref<1x32xf32, #tpu.memory_space<vmem>>, %arg7: memref<1x32xf32, #tpu.memory_space<vmem>>) attributes {dimension_semantics = [#tpu.dimension_semantics<parallel>, #tpu.dimension_semantics<arbitrary>], iteration_bounds = array<i64: 2, 1>, scalar_prefetch = 0 : i64, scratch_operands = 2 : i64, tpu.core_type = #tpu.core_type<tc>, window_params = [{transform_indices = @transform_0, window_bounds = array<i64: 1, 32, 64>}, {pipeline_mode = #tpu.pipeline_mode<synchronous>, transform_indices = @transform_1, window_bounds = array<i64: 32, 2>}, {pipeline_mode = #tpu.pipeline_mode<synchronous>, transform_indices = @transform_2, window_bounds = array<i64: 2, 32>}, {transform_indices = @transform_3, window_bounds = array<i64: 1, 1, 32>}]} {
    %c0_i32 = arith.constant 0 : i32
    %0 = arith.cmpi eq, %arg1, %c0_i32 : i32
    %1 = arith.extui %0 : i1 to i32
    %c0_i32_0 = arith.constant 0 : i32
    %2 = arith.cmpi ne, %1, %c0_i32_0 : i32
    scf.if %2 {
      %cst_14 = arith.constant 0.000000e+00 : f32
      %15 = vector.broadcast %cst_14 : f32 to vector<1x32xf32>
      %c0_15 = arith.constant 0 : index
      %c0_16 = arith.constant 0 : index
      %16 = vector.load %arg6[%c0_15, %c0_16] : memref<1x32xf32, #tpu.memory_space<vmem>>, vector<1x32xf32>
      tpu.vector_store %arg6[%c0_15, %c0_16], %15 {strides = array<i32>} : memref<1x32xf32, #tpu.memory_space<vmem>>, vector<1x32xf32>,
      %cst_17 = arith.constant 0xFF800000 : f32
      %17 = vector.broadcast %cst_17 : f32 to vector<1x32xf32>
      %c0_18 = arith.constant 0 : index
      %c0_19 = arith.constant 0 : index
      %18 = vector.load %arg7[%c0_18, %c0_19] : memref<1x32xf32, #tpu.memory_space<vmem>>, vector<1x32xf32>
      tpu.vector_store %arg7[%c0_18, %c0_19], %17 {strides = array<i32>} : memref<1x32xf32, #tpu.memory_space<vmem>>, vector<1x32xf32>,
    } else {
    }
    %c0 = arith.constant 0 : index
    %c0_1 = arith.constant 0 : index
    %c0_2 = arith.constant 0 : index
    %3 = vector.load %arg2[%c0, %c0_1, %c0_2] : memref<1x32x64xf32, #tpu.memory_space<vmem>>, vector<1x32x64xf32>
    %c0_3 = arith.constant 0 : index
    %c0_4 = arith.constant 0 : index
    %4 = vector.load %arg6[%c0_3, %c0_4] : memref<1x32xf32, #tpu.memory_space<vmem>>, vector<1x32xf32>
    %cst = arith.constant dense<0.000000e+00> : vector<1x32xf32>
    %5 = vector.multi_reduction <add>, %3, %cst [2] : vector<1x32x64xf32> to vector<1x32xf32>
    %6 = arith.addf %4, %5 : vector<1x32xf32>
    %c0_5 = arith.constant 0 : index
    %c0_6 = arith.constant 0 : index
    %7 = vector.load %arg6[%c0_5, %c0_6] : memref<1x32xf32, #tpu.memory_space<vmem>>, vector<1x32xf32>
    tpu.vector_store %arg6[%c0_5, %c0_6], %6 {strides = array<i32>} : memref<1x32xf32, #tpu.memory_space<vmem>>, vector<1x32xf32>,
    %c0_7 = arith.constant 0 : index
    %c0_8 = arith.constant 0 : index
    %8 = vector.load %arg7[%c0_7, %c0_8] : memref<1x32xf32, #tpu.memory_space<vmem>>, vector<1x32xf32>
    %cst_9 = arith.constant dense<0xFF800000> : vector<1x32xf32>
    %9 = vector.multi_reduction <maximumf>, %3, %cst_9 [2] : vector<1x32x64xf32> to vector<1x32xf32>
    %10 = arith.maximumf %8, %9 : vector<1x32xf32>
    %c0_10 = arith.constant 0 : index
    %c0_11 = arith.constant 0 : index
    %11 = vector.load %arg7[%c0_10, %c0_11] : memref<1x32xf32, #tpu.memory_space<vmem>>, vector<1x32xf32>
    tpu.vector_store %arg7[%c0_10, %c0_11], %10 {strides = array<i32>} : memref<1x32xf32, #tpu.memory_space<vmem>>, vector<1x32xf32>,
    %c0_i32_12 = arith.constant 0 : i32
    %12 = arith.cmpi eq, %arg1, %c0_i32_12 : i32
    %13 = arith.extui %12 : i1 to i32
    %c0_i32_13 = arith.constant 0 : i32
    %14 = arith.cmpi ne, %13, %c0_i32_13 : i32
    scf.if %14 {
      %c0_14 = arith.constant 0 : index
      %c0_15 = arith.constant 0 : index
      %15 = vector.load %arg3[%c0_14, %c0_15] : memref<32x2xf32, #tpu.memory_space<vmem>>, vector<32x2xf32>
      %c0_16 = arith.constant 0 : index
      %c0_17 = arith.constant 0 : index
      %16 = vector.load %arg4[%c0_16, %c0_17] : memref<2x32xf32, #tpu.memory_space<vmem>>, vector<2x32xf32>
      %c0_18 = arith.constant 0 : index
      %c0_19 = arith.constant 0 : index
      %17 = vector.load %arg6[%c0_18, %c0_19] : memref<1x32xf32, #tpu.memory_space<vmem>>, vector<1x32xf32>
      %cst_20 = arith.constant 1.562500e-02 : f32
      %18 = vector.broadcast %cst_20 : f32 to vector<1x32xf32>
      %19 = arith.mulf %17, %18 : vector<1x32xf32>
      %cst_21 = arith.constant dense<0.000000e+00> : vector<1x2xf32>
      %20 = tpu.matmul %19, %15, %cst_21 {dimension_numbers = #tpu.dot_dimension_numbers<[1], [0], [0], [1], [0, 0, 1, 1], [], []>} : vector<1x32xf32>, vector<32x2xf32>, vector<1x2xf32> -> vector<1x2xf32>
      %cst_22 = arith.constant 0.000000e+00 : f32
      %21 = vector.broadcast %cst_22 : f32 to vector<1x2xf32>
      %22 = arith.maximumf %20, %21 : vector<1x2xf32>
      %cst_23 = arith.constant dense<0.000000e+00> : vector<1x32xf32>
      %23 = tpu.matmul %22, %16, %cst_23 {dimension_numbers = #tpu.dot_dimension_numbers<[1], [0], [0], [1], [0, 0, 1, 1], [], []>} : vector<1x2xf32>, vector<2x32xf32>, vector<1x32xf32> -> vector<1x32xf32>
      %c0_24 = arith.constant 0 : index
      %c0_25 = arith.constant 0 : index
      %24 = vector.load %arg7[%c0_24, %c0_25] : memref<1x32xf32, #tpu.memory_space<vmem>>, vector<1x32xf32>
      %cst_26 = arith.constant dense<0.000000e+00> : vector<1x2xf32>
      %25 = tpu.matmul %24, %15, %cst_26 {dimension_numbers = #tpu.dot_dimension_numbers<[1], [0], [0], [1], [0, 0, 1, 1], [], []>} : vector<1x32xf32>, vector<32x2xf32>, vector<1x2xf32> -> vector<1x2xf32>
      %cst_27 = arith.constant 0.000000e+00 : f32
      %26 = vector.broadcast %cst_27 : f32 to vector<1x2xf32>
      %27 = arith.maximumf %25, %26 : vector<1x2xf32>
      %cst_28 = arith.constant dense<0.000000e+00> : vector<1x32xf32>
      %28 = tpu.matmul %27, %16, %cst_28 {dimension_numbers = #tpu.dot_dimension_numbers<[1], [0], [0], [1], [0, 0, 1, 1], [], []>} : vector<1x2xf32>, vector<2x32xf32>, vector<1x32xf32> -> vector<1x32xf32>
      %29 = arith.addf %23, %28 : vector<1x32xf32>
      %30 = arith.negf %29 : vector<1x32xf32>
      %31 = math.exp %30 : vector<1x32xf32>
      %cst_29 = arith.constant 1.000000e+00 : f32
      %32 = vector.broadcast %cst_29 : f32 to vector<1x32xf32>
      %33 = arith.addf %32, %31 : vector<1x32xf32>
      %34 = arith.divf %32, %33 : vector<1x32xf32>
      %35 = vector.shape_cast %34 : vector<1x32xf32> to vector<1x1x32xf32>
      %c0_30 = arith.constant 0 : index
      %c0_31 = arith.constant 0 : index
      %c0_32 = arith.constant 0 : index
      %36 = vector.load %arg5[%c0_30, %c0_31, %c0_32] : memref<1x1x32xf32, #tpu.memory_space<vmem>>, vector<1x1x32xf32>
      tpu.vector_store %arg5[%c0_30, %c0_31, %c0_32], %35 {strides = array<i32>} : memref<1x1x32xf32, #tpu.memory_space<vmem>>, vector<1x1x32xf32>,
    } else {
    }
    return
  }
  func.func @transform_0(%arg0: i32, %arg1: i32) -> (i32, i32, i32) {
    %c0_i32 = arith.constant 0 : i32
    %c0_i32_0 = arith.constant 0 : i32
    return %arg0, %c0_i32, %arg1 : i32, i32, i32
  }
  func.func @transform_1(%arg0: i32, %arg1: i32) -> (i32, i32) {
    %c0_i32 = arith.constant 0 : i32
    %c0_i32_0 = arith.constant 0 : i32
    %c0_i32_1 = arith.constant 0 : i32
    return %c0_i32, %c0_i32_0 : i32, i32
  }
  func.func @transform_2(%arg0: i32, %arg1: i32) -> (i32, i32) {
    %c0_i32 = arith.constant 0 : i32
    %c0_i32_0 = arith.constant 0 : i32
    %c0_i32_1 = arith.constant 0 : i32
    return %c0_i32, %c0_i32_0 : i32, i32
  }
  func.func @transform_3(%arg0: i32, %arg1: i32) -> (i32, i32, i32) {
    %c0_i32 = arith.constant 0 : i32
    %c0_i32_0 = arith.constant 0 : i32
    %c0_i32_1 = arith.constant 0 : i32
    return %arg0, %c0_i32, %c0_i32_0 : i32, i32, i32
  }
}

</mosaic_0001>

<bundles_post_ra>
// kernel: tpu_custom_call.1
= control target key start
LH: loop header
LB: loop body
LE: loop exit
PB: predicated region body
PF: predicated region fallthrough
CT: control target
= control target key end

     0   :  { %8 = vsyncpa [#allocation5], 0  ;;  %s2080_s0 = inlined_call_operand.hbm [shape: f32[2,32,64], index: 0, kind: input, shape index: {}]   ;;  %s2081_s1 = inlined_call_operand.vmem [shape: f32[32,2], index: 1, kind: input, shape index: {}]   ;;  %s2082_s2 = inlined_call_operand.vmem [shape: f32[2,32], index: 2, kind: input, shape index: {}]   ;;  %s2083_s3 = inlined_call_operand.hbm [shape: f32[2,1,32], index: 3, kind: output, shape index: {}]  }
   0x1   :  { %10 = vsyncpa [#allocation5 + $0x1], 0 }
   0x2   :  { %11 = vsyncpa [#allocation6], 0 }
   0x3   :  { %13 = vsyncpa [#allocation6 + $0x1], 0  ;;  %s1708_s12 = smov 0   ;;  %s1710_s13 = smov 0  }
   0x4   :  { %s1712_s14 = smov 0   ;;  %s1714_s15 = smov 0  }
   0x5   :  { %s1716_s16 = smov 0   ;;  %s1718_s17 = smov 0  }
   0x6 LB: > { %s1409_s18 = sadd.s32 4294967295, %s1676_s17   ;;  %s1410_s19 = sadd.s32 4294967294, %s1676_s17   ;;  %s1676_s17 = sphi %s1718_s17, %s19_s17   ;;  %s1672_s16 = sphi %s1716_s16, %s2098_s16   ;;  %s1668_s15 = sphi %s1714_s15, %s2097_s15   ;;  %s1664_s14 = sphi %s1712_s14, %s2096_s14   ;;  %s1660_s13 = sphi %s1710_s13, %s2095_s13   ;;  %s1656_s12 = sphi %s1708_s12, %s2094_s12  }
   0x7   : > { %s31_s20 = sadd.s32 1, %s1672_s16  ;;  %s40_s21 = sadd.s32 1, %s1664_s14 }
   0x8   : > { %p33_p0 = scmp.ge.s32.totalorder %s31_s20, 2  ;;  %p47_p1 = scmp.ne.s32.totalorder %s1664_s14, %s1660_s13 }
   0x9   : > { %p48_p2 = scmp.eq.s32.totalorder %s1676_s17, 0  ;;  %p53_p3 = scmp.ne.s32.totalorder %s1660_s13, %s1656_s12 }
   0xa   : > { %s2100_s20 = smov (%p33_p0, %s31_s20), 0  ;;  %p54_p5 = scmp.eq.s32.totalorder %s1409_s18, 0 }
   0xb   : > { %p1749_p4 = por %p48_p2, %p47_p1  ;;  %s35_s23 = ssub.s32 %s1672_s16, %s2100_s20 }
   0xc   : > { %p119_p6 = scmp.eq.s32.totalorder %s1409_s18, 1  ;;  %p38_p7 = scmp.eq.s32.totalorder %s35_s23, 0 }
   0xd   : > { %p1755_p8 = por %p54_p5, %p53_p3  ;;  %p125_p10 = scmp.eq.s32.totalorder %s1410_s19, 1 }
   0xe   : > { %p1759_p9 = por %p119_p6, %p47_p1  ;;  %p1500_p13 = scmp.lt.s32.totalorder %s1676_s17, 2 }
   0xf   : > { %s1764_s26 = scalar_select %p38_p7, %s1664_s14, %s40_s21  }
  0x10   : > { %s2087_s25 = scalar_select %p1759_p9, 1, 0 }
  0x11   : > { %p1766_p11 = por %p125_p10, %p53_p3  ;;  %s151_s28 = sand.u32 1, %s1664_s14  }
  0x12   : > { %s1413_s29 = sshll.u32 %s151_s28, 5  ;;  %s1428_s30 = sshll.u32 %s1672_s16, 9 }
  0x13   : > { %s2088_s27 = scalar_select %p1766_p11, 1, 0 }
  0x14   : > { %s1777_s6 = scalar_lea.hbm %s2080_s0, %s1428_s30  ;;  %s155_s7 = scalar_lea.vmem [#allocation4], %s1413_s29 }
  0x15   : > { %s163_s8 = sshll.u32 %s155_s7, 4  ;;  %p1783_p0 = pnand %p1500_p13, %p1749_p4  ;;  %s1779_s8 = int_to_ptr.vmem [resolvable:$true] %s163_s8 }
  0x16   : > { %s1788_s10 = scalar_lea.sflag [#allocation5], %s151_s28  ;;  %s1564_s11 = scalar_lea.hbm %s1777_s6, 512 }
  0x17   : > { %p1565_p2 = scmp.ne.s32.totalorder %s1777_s6, %s1564_s11  ;;  %p1566_p3 = pneg %p1783_p0 }
  0x18   : > { %s1569_s21 = scalar_lea.hbm %s2080_s0, 1024  ;;  %p1570_p4 = scmp.lt.u32.totalorder %s1777_s6, %s2080_s0 }
  0x19   : > { %p1567_p5 = pnand %p1566_p3, %p1565_p2  ;;  %p1571_p7 = scmp.lt.u32.totalorder %s1569_s21, %s1564_s11 }
  0x1a   : > { %p1573_p13 = scmp.lt.u32.totalorder %s1564_s11, %s1777_s6 }
  0x1b   : > { %p1568_p6 = pneg %p1567_p5  ;;  %p1572_p10 = por %p1571_p7, %p1570_p4 }
  0x1d   : > { %p1574_p12 = por %p1573_p13, %p1572_p10 }
  0x1f   : > { %p1575_p1 = pnand %p1574_p12, %p1568_p6 }
  0x21   : > { %1578 = shalt.err (!%p1575_p1)
}
  0x22   : > { %s1579_s28 = scalar_lea.vmem %s1779_s8, 512  ;;  %s1678_s29 = smov [#allocation4]  }
  0x23   : > { %p1580_p2 = scmp.ne.s32.totalorder %s1779_s8, %s1579_s28  ;;  %s1584_s30 = sshll.u32 %s1678_s29, 4  ;;  %s1585_s30 = int_to_ptr.vmem [resolvable:$false] %s1584_s30 }
  0x24   : > { %s1586_s4 = scalar_lea.vmem %s1585_s30, 1024  ;;  %p1587_p9 = scmp.lt.s32.totalorder %s1779_s8, %s1585_s30 }
  0x25   : > { %p1582_p5 = pnand %p1580_p2, %p1566_p3  ;;  %p1588_p4 = scmp.lt.s32.totalorder %s1586_s4, %s1579_s28 }
  0x27   : > { %p1583_p11 = pneg %p1582_p5  ;;  %p1589_p7 = por %p1588_p4, %p1587_p9 }
  0x29   : > { %p1590_p10 = pnand %p1589_p7, %p1583_p11 }
  0x2b   : > { %1593 = shalt.err (!%p1590_p10)
}
  0x2c   : > { %s1679_s5 = smov 128   ;;  %s1680_s7 = smov 8  }
  0x2d   : > { %1495 = dma.hbm_to_vmem [thread:$0]  (!%p1783_p0), %s1777_s6, 512, %s1779_s8, %s1788_s10, %s1679_s5, %s1679_s5, %s1680_s7  }
  0x2e   : > { %p171_p12 = scmp.lt.s32.totalorder %s1676_s17, 3  ;;  %p2090_p1 = scmp.ge.s32.totalorder %s1676_s17, 1 }
  0x30   : > { %p172_p3 = pnand %p2090_p1, %p171_p12 }
  0x31   : > { %s1820_s11 = sand.u32 (!%p172_p3), 1, %s1660_s13  }
  0x32   : > { %175 = sbr.rel (%p172_p3) target bundleno = 864 (0x360), region = 32  ;;  %s1417_s18 = sshll.u32 (!%p172_p3), %s1820_s11, 5 }
  0x33   : > { %s178_s19 = scalar_lea.sflag (!%p172_p3), [#allocation5], %s1820_s11  ;;  %s181_s21 = scalar_lea.vmem (!%p172_p3), [#allocation4], %s1417_s18 }
  0x39   : > { %1647 = dma.done.wait (%p1755_p8), %s178_s19, 512  }
  0x3a   : > { %1649 = vsyncadd (%p1755_p8), %s178_s19, 4294966784  ;;  %vm215_vm0 = vcmask 523264   ;;  %v210_v0 = vld [vmem:[%s181_s21] sm:$0xff]  ;;  %v211_v1 = vld [vmem:[%s181_s21 + $0x8] sm:$0xff]  ;;  %v1681_v12 = vmov 0   ;;  %v232_v13 = vlaneseq  ;;  %vm207_vm1 = vcmask 253952  }
  0x3b   : > { %v212_v2 = vld [vmem:[%s181_s21 + $0x10] sm:$0xff]  ;;  %v216_v3 = vsel %vm215_vm0, %v210_v0, 0.0  ;;  %v213_v5 = vld [vmem:[%s181_s21 + $0x18] sm:$0xff]  ;;  %v219_v6 = vsel %vm215_vm0, %v211_v1, 0.0  ;;  %v614_v8 = vsel %vm215_vm0, %v210_v0, -inf  ;;  %v617_v9 = vsel %vm215_vm0, %v211_v1, -inf  ;;  %1558 = vset.pattern.permute.xlu0 %v1681_v12  ;;  %1559 = vset.pattern.permute.xlu1 %v1681_v12 }
  0x3c   : > { %v222_v4 = vsel %vm215_vm0, %v212_v2, 0.0  ;;  %217 = vadd.xlane.f32.xlu0 %v216_v3  ;;  %v225_v7 = vsel %vm215_vm0, %v213_v5, 0.0  ;;  %v620_v10 = vsel %vm215_vm0, %v212_v2, -inf  ;;  %v623_v11 = vsel %vm215_vm0, %v213_v5, -inf  ;;  %s1425_s4 = sshll.u32 %s1668_s15, 4  ;;  %s202_s5 = scalar_lea.vmem [#allocation7], %s1820_s11 }
  0x3d   : > { %223 = vadd.xlane.f32.xlu1 %v222_v4  ;;  %v1682_v14 = vmov 1966171168   ;;  %v1837_v16 = vshrl.u32 %v232_v13, 7  ;;  %vm1686_vm2 = vmmov 0   ;;  %vm579_vm3 = vcmask 130112   ;;  %s1333_s7 = sshll.u32 %s202_s5, 4  ;;  %s2030_s21 = scalar_lea.hbm %s2083_s3, %s1425_s4  ;;  %s2032_s7 = int_to_ptr.vmem [resolvable:$true] %s1333_s7 }
  0x3e   : > { %v365_v15 = vunpack.c.l.s4 %v1682_v14  ;;  %vm586_vm4 = vcmask 195712   ;;  %vm593_vm5 = vcmask 261312   ;;  %vm1012_vm6 = vcmask 261120   ;;  %s1321_s24 = scalar_lea.sflag [#allocation6], %s1820_s11  ;;  %s1594_s6 = scalar_lea.vmem %s2032_s7, 16 }
  0x3f   : > { %v1840_v18 = vsub.s32 0, %v1837_v16  ;;  %v1843_v19 = vsub.s32 1, %v1837_v16  ;;  %v1846_v20 = vsub.s32 2, %v1837_v16  ;;  %v1849_v21 = vsub.s32 3, %v1837_v16  ;;  %p1595_p8 = scmp.ne.s32.totalorder %s2032_s7, %s1594_s6  ;;  %p2091_p9 = scmp.ne.s32.totalorder %s2087_s25, 0 }
  0x40   : > { %220 = vadd.xlane.f32.xlu0 %v219_v6  ;;  %v366_v17 = vunpack.c.0.s8 %v365_v15  ;;  %v1852_v22 = vsub.s32 4, %v1837_v16  ;;  %v1855_v23 = vsub.s32 5, %v1837_v16  ;;  %v1858_v24 = vsub.s32 6, %v1837_v16  ;;  %s1687_s15 = smov [#allocation7]  }
  0x41   : > { %226 = vadd.xlane.f32.xlu1 %v225_v7  ;;  %v1861_v25 = vsub.s32 7, %v1837_v16  ;;  %vm1166_vm7 = vcmask 1041408   ;;  %vm1162_vm8 = vcmask 15360   ;;  %p1596_p11 = pnand %p1595_p8, %p2091_p9  ;;  %s1598_s8 = sshll.u32 %s1687_s15, 4  ;;  %s1599_s8 = int_to_ptr.vmem [resolvable:$false] %s1598_s8 }
  0x42   : > { %v1864_v28 = vsub.s32 %v366_v17, %v1837_v16  ;;  %s1600_s9 = scalar_lea.vmem %s1599_s8, 32  ;;  %p1601_p6 = scmp.lt.s32.totalorder %s2032_s7, %s1599_s8 }
  0x43   : > { %p1597_p0 = pneg %p1596_p11  ;;  %p1602_p13 = scmp.lt.s32.totalorder %s1600_s9, %s1594_s6 }
  0x44   : > { %615 = vmax.xlane.f32.xlu0 %v614_v8 }
  0x45   : > { %618 = vmax.xlane.f32.xlu1 %v617_v9  ;;  %p1603_p2 = por %p1602_p13, %p1601_p6 }
  0x47   : > { %p1604_p5 = pnand %p1603_p2, %p1597_p0 }
  0x48   : > { %621 = vmax.xlane.f32.xlu0 %v620_v10 }
  0x49   : > { %624 = vmax.xlane.f32.xlu1 %v623_v11 }
  0xc9   : > { %v218_v26 = vpop.xlane.xlu0 %217 }
  0xca   : > { %v224_v27 = vpop.xlane.xlu1 %223  ;;  %v235_v29 = vrot.slane %v218_v26, %v1840_v18  ;;  %v239_v30 = vrot.slane %v218_v26, %v1843_v19  ;;  %v243_v31 = vrot.slane %v218_v26, %v1846_v20  ;;  %v247_v32 = vrot.slane %v218_v26, %v1849_v21 }
  0xcb   : > { %v251_v33 = vrot.slane %v218_v26, %v1852_v22  ;;  %v255_v34 = vrot.slane %v218_v26, %v1855_v23  ;;  %v259_v35 = vrot.slane %v218_v26, %v1858_v24  ;;  %v263_v36 = vrot.slane %v218_v26, %v1861_v25 }
  0xcc   : > { %v360_v37 = vcombine.low %v235_v29, %v239_v30  ;;  %v361_v38 = vcombine.low %v243_v31, %v247_v32  ;;  %v299_v39 = vrot.slane %v224_v27, %v1840_v18  ;;  %v303_v40 = vrot.slane %v224_v27, %v1843_v19 }
  0xcd   : > { %v221_v41 = vpop.xlane.xlu0 %220  ;;  %v362_v42 = vcombine.low %v251_v33, %v255_v34  ;;  %v363_v43 = vcombine.low %v259_v35, %v263_v36  ;;  %v307_v44 = vrot.slane %v224_v27, %v1846_v20  ;;  %v311_v45 = vrot.slane %v224_v27, %v1849_v21 }
  0xce   : > { %v370_v46 = vrot.slane %v360_v37, %v1864_v28  ;;  %v377_v47 = vrot.slane %v361_v38, %v1864_v28  ;;  %v267_v48 = vrot.slane %v221_v41, %v1840_v18  ;;  %v271_v49 = vrot.slane %v221_v41, %v1843_v19  ;;  %v227_v2 = vpop.xlane.xlu1 %226 }
  0xcf   : > { %v384_v50 = vrot.slane %v362_v42, %v1864_v28  ;;  %v391_v51 = vrot.slane %v363_v43, %v1864_v28  ;;  %v275_v52 = vrot.slane %v221_v41, %v1846_v20  ;;  %v279_v53 = vrot.slane %v221_v41, %v1849_v21 }
  0xd0   : > { %v392_v54 = vcombine.low %v370_v46, %v377_v47  ;;  %v283_v55 = vrot.slane %v221_v41, %v1852_v22  ;;  %v287_v56 = vrot.slane %v221_v41, %v1855_v23  ;;  %v291_v57 = vrot.slane %v221_v41, %v1858_v24 }
  0xd1   : > { %v393_v58 = vcombine.low %v384_v50, %v391_v51  ;;  %v295_v59 = vrot.slane %v221_v41, %v1861_v25  ;;  %v409_v60 = vcombine.low %v267_v48, %v271_v49  ;;  %v410_v61 = vcombine.low %v275_v52, %v279_v53  ;;  %v616_v38 = vpop.xlane.xlu0 %615 }
  0xd2   : > { %v400_v62 = vrot.slane %v392_v54, %v1864_v28  ;;  %v411_v63 = vcombine.low %v283_v55, %v287_v56  ;;  %v315_v0 = vrot.slane %v224_v27, %v1852_v22  ;;  %v319_v1 = vrot.slane %v224_v27, %v1855_v23  ;;  %v619_v55 = vpop.xlane.xlu1 %618 }
  0xd3   : > { %v407_v3 = vrot.slane %v393_v58, %v1864_v28  ;;  %v412_v4 = vcombine.low %v291_v57, %v295_v59  ;;  %v419_v5 = vrot.slane %v409_v60, %v1864_v28  ;;  %v426_v6 = vrot.slane %v410_v61, %v1864_v28 }
  0xd4   : > { %v433_v7 = vrot.slane %v411_v63, %v1864_v28  ;;  %v323_v8 = vrot.slane %v224_v27, %v1858_v24  ;;  %v327_v9 = vrot.slane %v224_v27, %v1861_v25  ;;  %v458_v10 = vcombine.low %v299_v39, %v303_v40 }
  0xd5   : > { %v408_v11 = vcombine.low %v400_v62, %v407_v3  ;;  %v440_v12 = vrot.slane %v412_v4, %v1864_v28  ;;  %v441_v14 = vcombine.low %v419_v5, %v426_v6  ;;  %v459_v15 = vcombine.low %v307_v44, %v311_v45 }
  0xd6   : > { %v460_v17 = vcombine.low %v315_v0, %v319_v1  ;;  %v461_v26 = vcombine.low %v323_v8, %v327_v9  ;;  %v468_v29 = vrot.slane %v458_v10, %v1864_v28  ;;  %v331_v30 = vrot.slane %v227_v2, %v1840_v18 }
  0xd7   : > { %557 = vperm.xlu0 %1558, %v408_v11   ;;  %v442_v31 = vcombine.low %v433_v7, %v440_v12  ;;  %v449_v32 = vrot.slane %v441_v14, %v1864_v28  ;;  %v475_v33 = vrot.slane %v459_v15, %v1864_v28  ;;  %v335_v27 = vrot.slane %v227_v2, %v1843_v19 }
  0xd8   : > { %v482_v34 = vrot.slane %v460_v17, %v1864_v28  ;;  %v489_v35 = vrot.slane %v461_v26, %v1864_v28  ;;  %v339_v36 = vrot.slane %v227_v2, %v1846_v20  ;;  %v343_v37 = vrot.slane %v227_v2, %v1849_v21  ;;  %v622_v26 = vpop.xlane.xlu0 %621 }
  0xd9   : > { %v456_v39 = vrot.slane %v442_v31, %v1864_v28  ;;  %v490_v40 = vcombine.low %v468_v29, %v475_v33  ;;  %v347_v41 = vrot.slane %v227_v2, %v1852_v22  ;;  %v351_v42 = vrot.slane %v227_v2, %v1855_v23 }
  0xda   : > { %v491_v43 = vcombine.low %v482_v34, %v489_v35  ;;  %v355_v44 = vrot.slane %v227_v2, %v1858_v24  ;;  %v359_v45 = vrot.slane %v227_v2, %v1861_v25  ;;  %v507_v46 = vcombine.low %v331_v30, %v335_v27 }
  0xdb   : > { %v457_v47 = vcombine.low %v449_v32, %v456_v39  ;;  %v498_v48 = vrot.slane %v490_v40, %v1864_v28  ;;  %v508_v49 = vcombine.low %v339_v36, %v343_v37  ;;  %v509_v50 = vcombine.low %v347_v41, %v351_v42 }
  0xdc   : > { %v505_v51 = vrot.slane %v491_v43, %v1864_v28  ;;  %v510_v52 = vcombine.low %v355_v44, %v359_v45  ;;  %v517_v53 = vrot.slane %v507_v46, %v1864_v28  ;;  %v633_v54 = vrot.slane %v616_v38, %v1840_v18 }
  0xdd   : > { %560 = vperm.xlu1 %1559, %v457_v47   ;;  %v524_v56 = vrot.slane %v508_v49, %v1864_v28  ;;  %v531_v57 = vrot.slane %v509_v50, %v1864_v28  ;;  %v637_v58 = vrot.slane %v616_v38, %v1843_v19  ;;  %v641_v59 = vrot.slane %v616_v38, %v1846_v20 }
  0xde   : > { %v506_v60 = vcombine.low %v498_v48, %v505_v51  ;;  %v538_v61 = vrot.slane %v510_v52, %v1864_v28  ;;  %v645_v62 = vrot.slane %v616_v38, %v1849_v21  ;;  %v649_v63 = vrot.slane %v616_v38, %v1852_v22  ;;  %v625_v48 = vpop.xlane.xlu1 %624 }
  0xdf   : > { %v539_v0 = vcombine.low %v517_v53, %v524_v56  ;;  %v653_v1 = vrot.slane %v616_v38, %v1855_v23  ;;  %v657_v2 = vrot.slane %v616_v38, %v1858_v24  ;;  %v661_v3 = vrot.slane %v616_v38, %v1861_v25 }
  0xe0   : > { %v540_v4 = vcombine.low %v531_v57, %v538_v61  ;;  %v758_v5 = vcombine.low %v633_v54, %v637_v58  ;;  %v759_v6 = vcombine.low %v641_v59, %v645_v62  ;;  %v665_v7 = vrot.slane %v619_v55, %v1840_v18 }
  0xe1   : > { %563 = vperm.xlu1 %1559, %v506_v60   ;;  %v547_v8 = vrot.slane %v539_v0, %v1864_v28  ;;  %v760_v9 = vcombine.low %v649_v63, %v653_v1  ;;  %v761_v10 = vcombine.low %v657_v2, %v661_v3  ;;  %v669_v11 = vrot.slane %v619_v55, %v1843_v19 }
  0xe2   : > { %v554_v12 = vrot.slane %v540_v4, %v1864_v28  ;;  %v768_v14 = vrot.slane %v758_v5, %v1864_v28  ;;  %v775_v15 = vrot.slane %v759_v6, %v1864_v28  ;;  %v673_v17 = vrot.slane %v619_v55, %v1846_v20 }
  0xe3   : > { %v782_v29 = vrot.slane %v760_v9, %v1864_v28  ;;  %v789_v30 = vrot.slane %v761_v10, %v1864_v28  ;;  %v677_v31 = vrot.slane %v619_v55, %v1849_v21  ;;  %v681_v32 = vrot.slane %v619_v55, %v1852_v22 }
  0xe4   : > { %v555_v33 = vcombine.low %v547_v8, %v554_v12  ;;  %v790_v27 = vcombine.low %v768_v14, %v775_v15  ;;  %v685_v34 = vrot.slane %v619_v55, %v1855_v23  ;;  %v689_v35 = vrot.slane %v619_v55, %v1858_v24 }
  0xe5   : > { %v791_v36 = vcombine.low %v782_v29, %v789_v30  ;;  %v693_v37 = vrot.slane %v619_v55, %v1861_v25  ;;  %v807_v38 = vcombine.low %v665_v7, %v669_v11  ;;  %v808_v39 = vcombine.low %v673_v17, %v677_v31 }
  0xe6   : > { %566 = vperm.xlu1 %1559, %v555_v33   ;;  %v798_v40 = vrot.slane %v790_v27, %v1864_v28  ;;  %v809_v41 = vcombine.low %v681_v32, %v685_v34  ;;  %v697_v42 = vrot.slane %v622_v26, %v1840_v18  ;;  %v701_v43 = vrot.slane %v622_v26, %v1843_v19  ;;  %v1005_v33 = vld [vmem:[%s2081_s1] sm:$0xff]  ;;  %v1006_v27 = vld [vmem:[%s2081_s1 + $0x8] sm:$0xff] }
  0xe7   : > { %v805_v44 = vrot.slane %v791_v36, %v1864_v28  ;;  %v810_v45 = vcombine.low %v689_v35, %v693_v37  ;;  %v817_v46 = vrot.slane %v807_v38, %v1864_v28  ;;  %v824_v47 = vrot.slane %v808_v39, %v1864_v28 }
  0xe8   : > { %v831_v49 = vrot.slane %v809_v41, %v1864_v28  ;;  %v705_v50 = vrot.slane %v622_v26, %v1846_v20  ;;  %v709_v51 = vrot.slane %v622_v26, %v1849_v21  ;;  %v713_v52 = vrot.slane %v622_v26, %v1852_v22  ;;  %v1008_v41 = vld [vmem:[%s2081_s1 + $0x18] sm:$0xff] }
  0xe9   : > { %v806_v53 = vcombine.low %v798_v40, %v805_v44  ;;  %v838_v54 = vrot.slane %v810_v45, %v1864_v28  ;;  %v839_v55 = vcombine.low %v817_v46, %v824_v47  ;;  %v717_v56 = vrot.slane %v622_v26, %v1855_v23  ;;  %v1007_v40 = vld [vmem:[%s2081_s1 + $0x10] sm:$0xff] }
  0xea   : > { %v721_v57 = vrot.slane %v622_v26, %v1858_v24  ;;  %v725_v58 = vrot.slane %v622_v26, %v1861_v25  ;;  %v856_v59 = vcombine.low %v697_v42, %v701_v43  ;;  %v857_v60 = vcombine.low %v705_v50, %v709_v51 }
  0xeb   : > { %955 = vperm.xlu1 %1559, %v806_v53   ;;  %v840_v61 = vcombine.low %v831_v49, %v838_v54  ;;  %v847_v62 = vrot.slane %v839_v55, %v1864_v28  ;;  %v858_v63 = vcombine.low %v713_v52, %v717_v56  ;;  %v729_v0 = vrot.slane %v625_v48, %v1840_v18 }
  0xec   : > { %v859_v1 = vcombine.low %v721_v57, %v725_v58  ;;  %v866_v2 = vrot.slane %v856_v59, %v1864_v28  ;;  %v873_v3 = vrot.slane %v857_v60, %v1864_v28  ;;  %v733_v4 = vrot.slane %v625_v48, %v1843_v19 }
  0xed   : > { %v854_v5 = vrot.slane %v840_v61, %v1864_v28  ;;  %v880_v6 = vrot.slane %v858_v63, %v1864_v28  ;;  %v737_v7 = vrot.slane %v625_v48, %v1846_v20  ;;  %v741_v8 = vrot.slane %v625_v48, %v1849_v21 }
  0xee   : > { %v887_v9 = vrot.slane %v859_v1, %v1864_v28  ;;  %v888_v10 = vcombine.low %v866_v2, %v873_v3  ;;  %v745_v18 = vrot.slane %v625_v48, %v1852_v22  ;;  %v749_v11 = vrot.slane %v625_v48, %v1855_v23 }
  0xef   : > { %v855_v12 = vcombine.low %v847_v62, %v854_v5  ;;  %v753_v14 = vrot.slane %v625_v48, %v1858_v24  ;;  %v757_v19 = vrot.slane %v625_v48, %v1861_v25  ;;  %v905_v15 = vcombine.low %v729_v0, %v733_v4 }
  0xf0   : > { %v889_v17 = vcombine.low %v880_v6, %v887_v9  ;;  %v896_v26 = vrot.slane %v888_v10, %v1864_v28  ;;  %v906_v29 = vcombine.low %v737_v7, %v741_v8  ;;  %v907_v20 = vcombine.low %v745_v18, %v749_v11 }
  0xf1   : > { %958 = vperm.xlu1 %1559, %v855_v12   ;;  %v908_v21 = vcombine.low %v753_v14, %v757_v19  ;;  %v915_v30 = vrot.slane %v905_v15, %v1864_v28  ;;  %v1683_v35 = vmov 0.0   ;;  %v1684_v37 = vmov 0.0|0.0  }
  0xf2   : > { %v903_v31 = vrot.slane %v889_v17, %v1864_v28  ;;  %v922_v22 = vrot.slane %v906_v29, %v1864_v28  ;;  %v929_v23 = vrot.slane %v907_v20, %v1864_v28  ;;  %208 = vst.msk [vmem:[#allocation2] sm:$0x1] %vm207_vm1, %v1683_v35  ;;  %1475 = vmatprep.subr.bf16.mxu0 %v1684_v37  ;;  %v1685_v43 = vmov -inf   ;;  %v1009_v20 = vld [vmem:[%s2082_s2] sm:$0x3] }
  0xf3   : > { %v936_v24 = vrot.slane %v908_v21, %v1864_v28  ;;  %v1476_v38 = vpack.c.bf16 %v1006_v27, %v1005_v33  ;;  %1481 = vmatprep.subr.bf16.mxu1 %v1684_v37  ;;  %209 = vst.msk [vmem:[#allocation3] sm:$0x1] %vm207_vm1, %v1685_v43  ;;  %v1479_v44 = vpack.c.bf16 %v1008_v41, %v1007_v40  ;;  %v569_v45 = vand.u32 127, %v232_v13 }
  0xf4   : > { %v904_v25 = vcombine.low %v896_v26, %v903_v31  ;;  %v937_v32 = vcombine.low %v915_v30, %v922_v22  ;;  %1451 = vmatprep.mubr.msk.f32.mxu0 %vm1686_vm2, %v1683_v35  ;;  %1462 = vmatprep.mubr.msk.f32.mxu1 %vm1686_vm2, %v1683_v35 }
  0xf5   : > { %v938_v34 = vcombine.low %v929_v23, %v936_v24  ;;  %1477 = vmatpush3.bf16.msra.mxu0 %v1476_v38  ;;  %1483 = vmatpush3.bf16.msra.mxu1 %v1476_v38  ;;  %v574_v46 = vadd.s32 4294967288, %v569_v45  ;;  %v581_v47 = vadd.s32 4294967280, %v569_v45  ;;  %v588_v50 = vadd.s32 4294967272, %v569_v45 }
  0xf6   : > { %961 = vperm.xlu1 %1559, %v904_v25   ;;  %v945_v36 = vrot.slane %v937_v32, %v1864_v28  ;;  %1478 = vmatprep.subr.bf16.mxu0 %v1684_v37  ;;  %v572_v52 = vsub.s32 %v569_v45, %v1837_v16 }
  0xf7   : > { %v952_v39 = vrot.slane %v938_v34, %v1864_v28  ;;  %1484 = vmatprep.subr.bf16.mxu1 %v1684_v37  ;;  %v577_v49 = vsub.s32 %v574_v46, %v1837_v16  ;;  %v584_v51 = vsub.s32 %v581_v47, %v1837_v16  ;;  %v591_v56 = vsub.s32 %v588_v50, %v1837_v16 }
  0xf9   : > { %v953_v42 = vcombine.low %v945_v36, %v952_v39  ;;  %1480 = vmatpush3.bf16.msra.mxu0 %v1479_v44  ;;  %1486 = vmatpush3.bf16.msra.mxu1 %v1479_v44  ;;  %v214_v0 = vld [vmem:[#allocation2] sm:$0x1] }
  0xfa   : > { %1470 = vmatprep.subr.mxu0 %v1683_v35  ;;  %1465 = vmatprep.subr.mxu1 %v1683_v35  ;;  %v613_v15 = vld [vmem:[#allocation3] sm:$0x1] }
  0xfb   : > { %964 = vperm.xlu1 %1559, %v953_v42  }
 0x156   : > { %v558_v54 = vpop.permute.xlu0 %557 }
 0x157   : > { %v573_v58 = vrot.slane %v558_v54, %v572_v52 }
 0x15c   : > { %v561_v48 = vpop.permute.xlu1 %560 }
 0x15d   : > { %v578_v55 = vrot.slane %v561_v48, %v577_v49 }
 0x15f   : > { %v580_v59 = vsel %vm579_vm3, %v578_v55, %v573_v58 }
 0x160   : > { %v564_v53 = vpop.permute.xlu1 %563 }
 0x161   : > { %v585_v57 = vrot.slane %v564_v53, %v584_v51 }
 0x163   : > { %v587_v61 = vsel %vm586_vm4, %v585_v57, %v580_v59 }
 0x165   : > { %v567_v13 = vpop.permute.xlu1 %566 }
 0x166   : > { %v592_v60 = vrot.slane %v567_v13, %v591_v56 }
 0x168   : > { %v594_v62 = vsel %vm593_vm5, %v592_v60, %v587_v61 }
 0x169   : > { %v601_v63 = vrot.slane %v594_v62, %v1864_v28 }
 0x16a   : > { %v956_v1 = vpop.permute.xlu1 %955 }
 0x16b   : > { %v608_v2 = vrot.slane %v601_v63, %v1864_v28  ;;  %v969_v9 = vrot.slane %v956_v1, %v572_v52 }
 0x16d   : > { %v610_v16 = vadd.f32 %v608_v2, %v214_v0 }
 0x16f   : > { %612 = vst.msk [vmem:[#allocation2] sm:$0x1] %vm207_vm1, %v610_v16 }
 0x170   : > { %v959_v3 = vpop.permute.xlu1 %958 }
 0x171   : > { %v973_v6 = vrot.slane %v959_v3, %v577_v49 }
 0x173   : > { %v974_v18 = vsel %vm579_vm3, %v973_v6, %v969_v9 }
 0x175   : > { %v962_v4 = vpop.permute.xlu1 %961 }
 0x176   : > { %v1010_v5 = vld [vmem:[#allocation2] sm:$0x1]  ;;  %v978_v8 = vrot.slane %v962_v4, %v584_v51 }
 0x177   : > { %v1011_v7 = vmul.f32 0.015625, %v1010_v5 }
 0x178   : > { %v979_v12 = vsel %vm586_vm4, %v978_v8, %v974_v18 }
 0x179   : > { %1452 = vmatmul.mubr.msk.f32.vlgmr.msra.gmra.mrb[0].mxu0 %vm1012_vm6, %v1011_v7 }
 0x17a   : > { %v965_v10 = vpop.permute.xlu1 %964  ;;  %1472 = vmatprep.mubr.msk.f32.mxu0 %vm1686_vm2, %v1683_v35  ;;  %1471 = vmatpush3.msk.msra.mxu0 %vm1166_vm7, %v1009_v20 }
 0x17b   : > { %v983_v11 = vrot.slane %v965_v10, %v591_v56 }
 0x17d   : > { %v984_v14 = vsel %vm593_vm5, %v983_v11, %v979_v12 }
 0x17e   : > { %v991_v19 = vrot.slane %v984_v14, %v1864_v28 }
 0x180   : > { %v998_v17 = vrot.slane %v991_v19, %v1864_v28 }
 0x182   : > { %v1000_v26 = vmax.f32 %v613_v15, %v998_v17 }
 0x184   : > { %1001 = vst.msk [vmem:[#allocation3] sm:$0x1] %vm207_vm1, %v1000_v26 }
 0x18b   : > { %v1087_v29 = vld [vmem:[#allocation3] sm:$0x1] }
 0x18c   : > { %1463 = vmatmul.mubr.msk.f32.vlgmr.msra.gmra.mrb[0].mxu1 %vm1012_vm6, %v1087_v29 }
 0x18d   : > { %1467 = vmatprep.mubr.msk.f32.mxu1 %vm1686_vm2, %v1683_v35  ;;  %1466 = vmatpush3.msk.msra.mxu1 %vm1166_vm7, %v1009_v20 }
 0x24c   : > { %v1082_v21 = vpop.f32.mrb[0].mxu0 }
 0x24d   : > { %v1086_v30 = vmax.f32 %v1082_v21, 0.0  ;;  %v1453_v28 = vpop.f32.mrb[1].mxu0 }
 0x24f   : > { %1473 = vmatmul.mubr.msk.f32.vlgmr.msra.gmra.mrb[2].mxu0 %vm1162_vm8, %v1086_v30 }
 0x25f   : > { %v1157_v31 = vpop.f32.mrb[0].mxu1 }
 0x260   : > { %v1161_v22 = vmax.f32 %v1157_v31, 0.0  ;;  %v1464_v23 = vpop.f32.mrb[1].mxu1 }
 0x262   : > { %1468 = vmatmul.mubr.msk.f32.vlgmr.msra.gmra.mrb[2].mxu1 %vm1162_vm8, %v1161_v22 }
 0x322   : > { %v1309_v24 = vpop.f32.mrb[2].mxu0 }
 0x323   : > { %v1474_v25 = vpop.f32.mrb[3].mxu0 }
 0x335   : > { %v1236_v32 = vpop.f32.mrb[2].mxu1 }
 0x336   : > { %v1310_v33 = vadd.f32 %v1309_v24, %v1236_v32  ;;  %v1469_v27 = vpop.f32.mrb[3].mxu1 }
 0x338   : > { %v1424_v34 = vmul.f32 -1.442695, %v1310_v33 }
 0x33a   : > { %1560 = vpow2.f32 %v1424_v34 }
 0x344   : > { %v1561_v35 = vpop.eup %1560 }
 0x345   : > { %v1316_v36 = vadd.f32 1.0, %v1561_v35 }
 0x347   : > { %1562 = vrcp.f32 %v1316_v36 }
 0x351   : > { %v1563_v37 = vpop.eup %1562 }
 0x352   : > { %1319 = vst.msk [vmem:[%s202_s5] sm:$0x1] %vm207_vm1, %v1563_v37 }
 0x353   : > { %1607 = shalt.err (!%p1604_p5)
}
 0x354   : > { %s1608_s11 = scalar_lea.hbm %s2030_s21, 16  ;;  %s1612_s23 = scalar_lea.hbm %s2083_s3, 32 }
 0x355   : > { %p1609_p4 = scmp.ne.s32.totalorder %s2030_s21, %s1608_s11  ;;  %p1613_p12 = scmp.lt.u32.totalorder %s2030_s21, %s2083_s3 }
 0x356   : > { %p1614_p1 = scmp.lt.u32.totalorder %s1612_s23, %s1608_s11  ;;  %p1616_p8 = scmp.lt.u32.totalorder %s1608_s11, %s2030_s21 }
 0x357   : > { %p1610_p7 = pnand %p1609_p4, %p2091_p9 }
 0x358   : > { %p1615_p3 = por %p1614_p1, %p1613_p12 }
 0x359   : > { %p1611_p10 = pneg %p1610_p7 }
 0x35a   : > { %p1617_p11 = por %p1616_p8, %p1615_p3 }
 0x35c   : > { %p1618_p0 = pnand %p1617_p11, %p1611_p10 }
 0x35e   : > { %1621 = shalt.err (!%p1618_p0)
}
 0x35f   : > { %1490 = dma.vmem_to_hbm [thread:$0]  (%p2091_p9), %s2032_s7, 16, %s2030_s21, %s1321_s24  }
 0x360 PF: > { %s1345_s30 = sand.u32 1, %s1656_s12   ;;  %p2092_p6 = scmp.ne.s32.totalorder %s2088_s27, 0 }
 0x361   : > { %p2093_p13 = scmp.ge.s32.totalorder %s1676_s17, 2  ;;  %s1346_s4 = scalar_lea.sflag [#allocation6], %s1345_s30 }
 0x363   : > { %p1497_p2 = pnand %p2093_p13, %p2092_p6 }
 0x365   : > { %1651 = dma.done.wait (!%p1497_p2), %s1346_s4, 16  }
 0x366   : > { %1653 = vsyncadd (!%p1497_p2), %s1346_s4, 4294967280  ;;  %s19_s17 = sadd.s32 1, %s1676_s17   ;;  %s2094_s12 = smov %s1660_s13 }
 0x367   : > { %p16_p5 = scmp.ge.s32.totalorder %s19_s17, 4   ;;  %s2095_s13 = smov %s1664_s14 }
 0x368   : > { %s2096_s14 = smov %s1764_s26  ;;  %s2097_s15 = smov %s1672_s16 }
 0x369   : > { %s2098_s16 = smov %s2100_s20  ;;  %18 = sbr.rel (!%p16_p5) target bundleno = 6 (0x6), region = 85 }
 0x370   :  { %1350 = vsyncpa [#allocation5], 1 }
 0x371   :  { %1352 = vsyncpa [#allocation5 + $0x1], 1 }
 0x372   :  { %1353 = vsyncpa [#allocation6], 1 }
 0x373   :  { %1355 = vsyncpa [#allocation6 + $0x1], 1 }

</bundles_post_ra>
